<compile_context>
chip_gen: v5e
topology: v5e:2x2
jax: 0.10.0
libtpu: 0.0.40
codegen_flags: <defaults>
</compile_context>

<pallas_src>
import functools

import jax
import jax.numpy as jnp
from jax.experimental import pallas as pl
from jax.experimental.pallas import tpu as pltpu


def _cdiv(a, b):
    return (a + b - 1) // b


def _round_up(a, b):
    return _cdiv(a, b) * b


def _cb_loss_kernel(x_ref, y_ref, w_ref, out_ref, *, gamma, loss_type):
    x = x_ref[...].astype(jnp.float32)          # (TR, W) logits tile
    y = y_ref[...].astype(jnp.float32)          # (TR, W) labels tile
    w = w_ref[...].astype(jnp.float32)          # (1,  W) class weights (broadcast)

    # One exp per element, shared by softplus and sigmoid.
    e = jnp.exp(-jnp.abs(x))                    # exp(-|x|) in (0, 1]
    # Numerically-stable BCE-with-logits: max(x,0) - x*y + log(1 + exp(-|x|))
    ce = jnp.maximum(x, 0.0) - x * y + jnp.log1p(e)

    if loss_type == "focal":
        # sigmoid(x) = where(x >= 0, 1, e) / (1 + e)
        inv = pl.reciprocal(1.0 + e, approx=True)
        probs = jnp.where(x >= 0.0, 1.0, e) * inv
        p_t = probs * y + (1.0 - probs) * (1.0 - y)
        u = 1.0 - p_t
        if gamma == 2.0:                        # static Python value -> square
            mod = u * u
        elif gamma == 1.0:
            mod = u
        elif gamma == 0.0:
            mod = jnp.ones_like(u)
        else:
            # explicit exp(gamma*log(u)); keep u==0 exactly 0 (no NaN from log(0)).
            mod = jnp.where(u > 0.0,
                            jnp.exp(gamma * jnp.log(jnp.maximum(u, 1e-30))),
                            0.0)
        loss = w * (mod * ce)
    else:  # 'bce' -> weighted BCE-with-logits, reduction='none'
        loss = w * ce

    tr, wd = loss.shape
    # Cheap partial reduce (VPU adds over the leading dim only); the final
    # cross-lane reduce and divide-by-count happen once, outside the kernel.
    out_ref[...] = loss.reshape(tr // 8, 8, wd).sum(axis=0)


def class_balanced_loss(logits, labels, class_weights, *, gamma=2.0,
                        loss_type="focal", tile_rows=512):
    """logits, labels: (N, C); class_weights: (1, C) or (C,). Returns scalar mean."""
    if loss_type not in ("focal", "bce"):
        raise ValueError("Unsupported loss type")

    N, C = logits.shape
    count = N * C                               # mean over ORIGINAL elements

    # --- lane-dense packing: fold k rows into the 128-lane dim when C | 128.
    k = 128 // C if (C < 128 and 128 % C == 0) else 1
    W = k * C
    lane_pad = (-W) % 128                       # only when k == 1 and C % 128 != 0
    Wp = W + lane_pad

    # class weights repeated across the k packed row-groups; zero-padded lanes
    # contribute exactly zero loss.
    w = jnp.tile(jnp.asarray(class_weights, jnp.float32).reshape(1, C), (1, k))
    if lane_pad:
        w = jnp.pad(w, ((0, 0), (0, lane_pad)))

    # --- row tiling (after packing).
    R = _cdiv(N, k)
    TR = max(8, min(_round_up(tile_rows, 8), _round_up(R, 8)))
    Rp = _round_up(R, TR)
    Np = Rp * k
    G = Rp // TR

    # --- pad the batch dim: logits=-1e4, labels=0 => exactly zero contribution.
    if Np != N:
        logits = jnp.concatenate(
            [logits, jnp.full((Np - N, C), -1e4, dtype=logits.dtype)], axis=0)
        labels = jnp.concatenate(
            [labels, jnp.zeros((Np - N, C), dtype=labels.dtype)], axis=0)

    x = logits.reshape(Rp, W)
    y = labels.reshape(Rp, W)
    if lane_pad:                                # zero-weight lanes kill these
        x = jnp.pad(x, ((0, 0), (0, lane_pad)))
        y = jnp.pad(y, ((0, 0), (0, lane_pad)))

    kernel = functools.partial(_cb_loss_kernel, gamma=gamma, loss_type=loss_type)

    in_bytes = (x.size * x.dtype.itemsize + y.size * y.dtype.itemsize
                + w.size * w.dtype.itemsize)
    out_bytes = G * 8 * Wp * 4
    # double-buffered streamed inputs + resident weights + output blocks (+ slack)
    est_vmem = (2 * TR * Wp * (x.dtype.itemsize + y.dtype.itemsize)
                + 2 * Wp * 4 + 2 * 8 * Wp * 4)
    vmem_limit = int(min(max(2 * est_vmem + (1 << 20), 16 << 20), 48 << 20))

    partials = pl.pallas_call(
        kernel,
        out_shape=jax.ShapeDtypeStruct((G * 8, Wp), jnp.float32),
        grid=(G,),
        in_specs=[
            pl.BlockSpec((TR, Wp), lambda i: (i, 0)),   # logits tile (streamed)
            pl.BlockSpec((TR, Wp), lambda i: (i, 0)),   # labels tile (streamed)
            pl.BlockSpec((1, Wp), lambda i: (0, 0)),    # class weights (resident)
        ],
        out_specs=pl.BlockSpec((8, Wp), lambda i: (i, 0)),
        compiler_params=pltpu.CompilerParams(
            dimension_semantics=("parallel",),
            vmem_limit_bytes=vmem_limit),
        cost_estimate=pl.CostEstimate(
            flops=16 * N * C,
            transcendentals=3 * N * C,
            bytes_accessed=in_bytes + out_bytes),
    )(x, y, w)

    return jnp.sum(partials) / jnp.float32(count)


def make_class_weights(samples_per_cls, beta=0.9999):
    """Deterministic parameter setup mirroring ClassBalancedLoss.__init__."""
    samples = jnp.asarray(samples_per_cls, dtype=jnp.float32)
    effective_num = 1.0 - jnp.power(jnp.float32(beta), samples)
    weights = (1.0 - beta) / (effective_num + 1e-8)
    weights = weights / jnp.sum(weights) * samples.shape[0]
    return weights[None, :]  # (1, C)


def _reference_loss(logits, labels, class_weights, gamma):
    """Pure-JAX reference matching the PyTorch focal branch."""
    x = logits.astype(jnp.float32)
    y = labels.astype(jnp.float32)
    ce = jnp.maximum(x, 0.0) - x * y + jnp.log1p(jnp.exp(-jnp.abs(x)))
    p = jax.nn.sigmoid(x)
    p_t = p * y + (1.0 - p) * (1.0 - y)
    return jnp.mean(class_weights * (1.0 - p_t) ** gamma * ce)


if __name__ == "__main__":
    N, C = 8, 16
    beta, gamma = 0.9999, 2.0

    # Deterministic per-class sample counts (module __init__ argument).
    samples_per_cls = [10 + 37 * i for i in range(C)]
    class_weights = make_class_weights(samples_per_cls, beta=beta)

    key = jax.random.PRNGKey(0)
    k_logits, k_labels = jax.random.split(key)
    logits = jax.random.normal(k_logits, (N, C), dtype=jnp.float32)
    labels = jax.random.bernoulli(k_labels, p=0.3, shape=(N, C)).astype(jnp.float32)

    loss = class_balanced_loss(logits, labels, class_weights,
                               gamma=gamma, loss_type="focal")
    loss = jax.block_until_ready(loss)

    ref = _reference_loss(logits, labels, class_weights, gamma)
    assert jnp.allclose(loss, ref, rtol=2e-2, atol=1e-5), (float(loss), float(ref))
    print("KERNEL_OK")
</pallas_src>

<mosaic_0001>
module attributes {stable_mosaic.version = 11 : i64} {
  func.func @_cb_loss_kernel(%arg0: i32, %arg1: memref<8x128xf32, #tpu.memory_space<vmem>>, %arg2: memref<8x128xf32, #tpu.memory_space<vmem>>, %arg3: memref<1x128xf32, #tpu.memory_space<vmem>>, %arg4: memref<8x128xf32, #tpu.memory_space<vmem>>) attributes {dimension_semantics = [#tpu.dimension_semantics<parallel>], iteration_bounds = array<i64: 1>, scalar_prefetch = 0 : i64, scratch_operands = 0 : i64, tpu.core_type = #tpu.core_type<tc>, window_params = [{transform_indices = @transform_0, window_bounds = array<i64: 8, 128>}, {transform_indices = @transform_1, window_bounds = array<i64: 8, 128>}, {pipeline_mode = #tpu.pipeline_mode<synchronous>, transform_indices = @transform_2, window_bounds = array<i64: 1, 128>}, {transform_indices = @transform_3, window_bounds = array<i64: 8, 128>}]} {
    %c0 = arith.constant 0 : index
    %c0_0 = arith.constant 0 : index
    %0 = vector.load %arg1[%c0, %c0_0] : memref<8x128xf32, #tpu.memory_space<vmem>>, vector<8x128xf32>
    %c0_1 = arith.constant 0 : index
    %c0_2 = arith.constant 0 : index
    %1 = vector.load %arg2[%c0_1, %c0_2] : memref<8x128xf32, #tpu.memory_space<vmem>>, vector<8x128xf32>
    %c0_3 = arith.constant 0 : index
    %c0_4 = arith.constant 0 : index
    %2 = vector.load %arg3[%c0_3, %c0_4] : memref<1x128xf32, #tpu.memory_space<vmem>>, vector<1x128xf32>
    %3 = math.absf %0 : vector<8x128xf32>
    %cst = arith.constant 0.000000e+00 : f32
    %4 = vector.broadcast %cst : f32 to vector<8x128xf32>
    %5 = arith.subf %4, %3 : vector<8x128xf32>
    %6 = math.exp %5 : vector<8x128xf32>
    %cst_5 = arith.constant 0.000000e+00 : f32
    %7 = vector.broadcast %cst_5 : f32 to vector<8x128xf32>
    %8 = arith.maximumf %0, %7 : vector<8x128xf32>
    %9 = arith.mulf %0, %1 : vector<8x128xf32>
    %10 = arith.subf %8, %9 : vector<8x128xf32>
    %11 = math.log1p %6 : vector<8x128xf32>
    %12 = arith.addf %10, %11 : vector<8x128xf32>
    %cst_6 = arith.constant 1.000000e+00 : f32
    %13 = vector.broadcast %cst_6 : f32 to vector<8x128xf32>
    %14 = arith.addf %13, %6 : vector<8x128xf32>
    %15 = tpu.reciprocal %14 {approx = true} : vector<8x128xf32> -> vector<8x128xf32>
    %cst_7 = arith.constant 0.000000e+00 : f32
    %16 = vector.broadcast %cst_7 : f32 to vector<8x128xf32>
    %17 = arith.cmpf oge, %0, %16 : vector<8x128xf32>
    %cst_8 = arith.constant 1.000000e+00 : f32
    %18 = vector.broadcast %cst_8 : f32 to vector<8x128xf32>
    %19 = arith.select %17, %18, %6 : vector<8x128xi1>, vector<8x128xf32>
    %20 = arith.mulf %19, %15 : vector<8x128xf32>
    %21 = arith.mulf %20, %1 : vector<8x128xf32>
    %cst_9 = arith.constant 1.000000e+00 : f32
    %22 = vector.broadcast %cst_9 : f32 to vector<8x128xf32>
    %23 = arith.subf %22, %20 : vector<8x128xf32>
    %cst_10 = arith.constant 1.000000e+00 : f32
    %24 = vector.broadcast %cst_10 : f32 to vector<8x128xf32>
    %25 = arith.subf %24, %1 : vector<8x128xf32>
    %26 = arith.mulf %23, %25 : vector<8x128xf32>
    %27 = arith.addf %21, %26 : vector<8x128xf32>
    %cst_11 = arith.constant 1.000000e+00 : f32
    %28 = vector.broadcast %cst_11 : f32 to vector<8x128xf32>
    %29 = arith.subf %28, %27 : vector<8x128xf32>
    %30 = arith.mulf %29, %29 : vector<8x128xf32>
    %31 = arith.mulf %30, %12 : vector<8x128xf32>
    %32 = vector.broadcast %2 : vector<1x128xf32> to vector<8x128xf32>
    %33 = arith.mulf %32, %31 : vector<8x128xf32>
    %34 = vector.shape_cast %33 : vector<8x128xf32> to vector<1x8x128xf32>
    %cst_12 = arith.constant dense<0.000000e+00> : vector<8x128xf32>
    %35 = vector.multi_reduction <add>, %34, %cst_12 [0] : vector<1x8x128xf32> to vector<8x128xf32>
    %c0_13 = arith.constant 0 : index
    %c0_14 = arith.constant 0 : index
    %36 = vector.load %arg4[%c0_13, %c0_14] : memref<8x128xf32, #tpu.memory_space<vmem>>, vector<8x128xf32>
    tpu.vector_store %arg4[%c0_13, %c0_14], %35 {strides = array<i32>} : memref<8x128xf32, #tpu.memory_space<vmem>>, vector<8x128xf32>,
    return
  }
  func.func @transform_0(%arg0: i32) -> (i32, i32) {
    %c0_i32 = arith.constant 0 : i32
    %c0_i32_0 = arith.constant 0 : i32
    return %arg0, %c0_i32 : i32, i32
  }
  func.func @transform_1(%arg0: i32) -> (i32, i32) {
    %c0_i32 = arith.constant 0 : i32
    %c0_i32_0 = arith.constant 0 : i32
    return %arg0, %c0_i32 : i32, i32
  }
  func.func @transform_2(%arg0: i32) -> (i32, i32) {
    %c0_i32 = arith.constant 0 : i32
    %c0_i32_0 = arith.constant 0 : i32
    %c0_i32_1 = arith.constant 0 : i32
    return %c0_i32, %c0_i32_0 : i32, i32
  }
  func.func @transform_3(%arg0: i32) -> (i32, i32) {
    %c0_i32 = arith.constant 0 : i32
    %c0_i32_0 = arith.constant 0 : i32
    return %arg0, %c0_i32 : i32, i32
  }
}

</mosaic_0001>

<bundles_post_ra>
// kernel: tpu_custom_call.1
= control target key start
LH: loop header
LB: loop body
LE: loop exit
PB: predicated region body
PF: predicated region fallthrough
CT: control target
= control target key end

     0   :  { %8 = vsyncpa [#allocation3], 0  ;;  %s223_s0 = inlined_call_operand.hbm [shape: f32[8,128], index: 0, kind: input, shape index: {}]   ;;  %s224_s1 = inlined_call_operand.hbm [shape: f32[8,128], index: 1, kind: input, shape index: {}]   ;;  %s225_s2 = inlined_call_operand.vmem [shape: f32[1,128], index: 2, kind: input, shape index: {}]   ;;  %s226_s3 = inlined_call_operand.hbm [shape: f32[8,128], index: 3, kind: output, shape index: {}]  }
   0x1   :  { %9 = vsyncpa [#allocation6], 0 }
   0x2   :  { %10 = vsyncpa [#allocation4], 0  ;;  %s16_s14 = sshll.u32 %s223_s0, 4  ;;  %s188_s15 = smov [#allocation2]   ;;  %s17_s14 = int_to_ptr.hbm [resolvable:$true] %s16_s14 }
   0x3   :  { %s18_s16 = sshll.u32 %s188_s15, 4  ;;  %s27_s19 = sshll.u32 %s224_s1, 4  ;;  %s19_s16 = int_to_ptr.vmem [resolvable:$true] %s18_s16  ;;  %s28_s19 = int_to_ptr.hbm [resolvable:$true] %s27_s19 }
   0x4   :  { %21 = dma.hbm_to_vmem [thread:$0]  %s17_s14, 128, %s19_s16, [#allocation3]  }
   0x5   :  { %s189_s20 = smov [#allocation5]  }
   0x6   :  { %s29_s21 = sshll.u32 %s189_s20, 4  ;;  %s30_s21 = int_to_ptr.vmem [resolvable:$true] %s29_s21 }
   0x7   :  { %32 = dma.hbm_to_vmem [thread:$0]  %s28_s19, 128, %s30_s21, [#allocation6]  }
   0x8   :  { %182 = dma.done.wait [#allocation3], 128  }
   0x9   :  { %183 = vsyncadd [#allocation3], 4294967168 }
   0xa   :  { %184 = dma.done.wait [#allocation6], 128  }
   0xb   :  { %185 = vsyncadd [#allocation6], 4294967168  ;;  %v43_v0 = vld [vmem:[#allocation2] sm:$0xff]  ;;  %v44_v7 = vld [vmem:[#allocation5] sm:$0xff]  ;;  %s190_s22 = smov [#allocation7]   ;;  %s89_s26 = sshll.u32 %s226_s3, 4  ;;  %s90_s26 = int_to_ptr.hbm [resolvable:$true] %s89_s26 }
   0xc   :  { %v46_v1 = vand.u32 2147483647, %v43_v0  ;;  %vm65_vm0 = vcmp.ge.f32.partialorder %v43_v0, 0.0  ;;  %v50_v13 = vmax.f32 %v43_v0, 0.0  ;;  %v51_v14 = vmul.f32 %v44_v7, %v43_v0  ;;  %v103_v28 = vld [vmem:[%s225_s2] ss:$0 sm:$0xff] }
   0xd   :  { %v70_v16 = vsub.f32 1.0, %v44_v7  ;;  %s87_s23 = sshll.u32 %s190_s22, 4  ;;  %s88_s23 = int_to_ptr.vmem [resolvable:$true] %s87_s23 }
   0xe   :  { %v47_v2 = vsub.f32 0.0, %v46_v1  ;;  %v52_v21 = vsub.f32 %v50_v13, %v51_v14 }
  0x10   :  { %v48_v3 = vmul.f32 1.442695, %v47_v2 }
  0x12   :  { %104 = vpow2.f32 %v48_v3 }
  0x18   :  { %v105_v4 = vpop.eup %104 }
  0x19   :  { %v53_v5 = vadd.f32 1.0, %v105_v4  ;;  %v56_v6 = vmul.f32 -0.5, %v105_v4  ;;  %v66_v9 = vsel %vm65_vm0, 1.0, %v105_v4  ;;  %v59_v11 = vand.u32 2147483647, %v105_v4 }
  0x1b   :  { %106 = vlog2.f32 %v53_v5  ;;  %v57_v8 = vadd.f32 1.0, %v56_v6  ;;  %vm60_vm1 = vcmp.lt.f32.partialorder %v59_v11, 0.0004427343 }
  0x1c   :  { %108 = vrcp.f32 %v53_v5 }
  0x1d   :  { %v58_v18 = vmul.f32 %v105_v4, %v57_v8 }
  0x21   :  { %v107_v10 = vpop.eup %106 }
  0x22   :  { %v109_v12 = vpop.eup %108  ;;  %v55_v17 = vmul.f32 0.6931472, %v107_v10 }
  0x23   :  { %v67_v15 = vmul.f32 %v109_v12, %v66_v9 }
  0x24   :  { %v61_v23 = vsel %vm60_vm1, %v58_v18, %v55_v17 }
  0x25   :  { %v68_v19 = vmul.f32 %v67_v15, %v44_v7  ;;  %v69_v20 = vsub.f32 1.0, %v67_v15  ;;  %v62_v25 = vadd.f32 %v61_v23, %v52_v21 }
  0x27   :  { %v71_v22 = vmul.f32 %v70_v16, %v69_v20 }
  0x29   :  { %v72_v24 = vadd.f32 %v71_v22, %v68_v19 }
  0x2b   :  { %v73_v26 = vsub.f32 1.0, %v72_v24 }
  0x2d   :  { %v74_v27 = vmul.f32 %v73_v26, %v73_v26 }
  0x2f   :  { %v75_v29 = vmul.f32 %v74_v27, %v62_v25 }
  0x31   :  { %v79_v30 = vmul.f32 %v103_v28, %v75_v29 }
  0x33   :  { %81 = vst [vmem:[#allocation7] sm:$0xff] %v79_v30 }
  0x34   :  { %92 = dma.vmem_to_hbm [thread:$0]  %s88_s23, 128, %s90_s26, [#allocation4]  }
  0x35   :  { %186 = dma.done.wait [#allocation4], 128  }
  0x36   :  { %187 = vsyncadd [#allocation4], 4294967168 }
  0x37   :  { %97 = vsyncpa [#allocation3], 1 }
  0x38   :  { %98 = vsyncpa [#allocation6], 1 }
  0x39   :  { %99 = vsyncpa [#allocation4], 1 }

</bundles_post_ra>
